<compile_context>
chip_gen: v5e
topology: v5e:2x2
jax: 0.10.0
libtpu: 0.0.40
codegen_flags: <defaults>
</compile_context>

<pallas_src>
import functools

import jax
import jax.numpy as jnp
from jax.experimental import pallas as pl
from jax.experimental.pallas import tpu as pltpu


def _dec_loss_kernel(q_ref, o_ref, colsum_ref, *, n_rows, tile_n):
    phase = pl.program_id(0)          # 0: accumulate col_sum, 1: accumulate loss
    t = pl.program_id(1)              # row-tile index

    ragged = (n_rows % tile_n) != 0   # static Python bool

    @pl.when(jnp.logical_and(phase == 0, t == 0))
    def _init():
        colsum_ref[...] = jnp.zeros_like(colsum_ref)
        o_ref[...] = jnp.zeros_like(o_ref)

    # Cast on load (native dtype streamed from HBM; f32 math in vregs).
    q = q_ref[...].astype(jnp.float32)                      # (tile_n, K)

    if ragged:
        rows = jax.lax.broadcasted_iota(jnp.int32, (tile_n, 1), 0) + t * tile_n
        valid = rows < n_rows                               # (tile_n, 1) bool
    else:
        valid = None

    @pl.when(phase == 0)
    def _accum_colsum():
        qv = q if valid is None else jnp.where(valid, q, 0.0)
        colsum_ref[...] += jnp.sum(qv, axis=0, keepdims=True)   # (1, K)

    @pl.when(phase == 1)
    def _accum_loss():
        qs = q if valid is None else jnp.where(valid, q, 1.0)   # keep log finite

        col_sum = colsum_ref[...]                           # (1, K), tiny
        inv_col = 1.0 / col_sum
        log_col = jnp.log(col_sum)

        log_q = jnp.log(qs)                                 # only (T,K) EUP op
        w = (qs * qs) * inv_col                             # (T, K)
        row_sum = jnp.sum(w, axis=1, keepdims=True)         # (T, 1)
        inv_row = 1.0 / row_sum

        # sum_k p*(log q - log colsum) = inv_row * sum_k w*(log q - log colsum)
        # sum_k p*log rowsum           = log rowsum   (since sum_k p == 1)
        dot_term = jnp.sum(w * (log_q - log_col), axis=1, keepdims=True)
        per_row = dot_term * inv_row - jnp.log(row_sum)     # (T, 1)
        if valid is not None:
            per_row = jnp.where(valid, per_row, 0.0)

        o_ref[...] += jnp.sum(per_row, keepdims=True)       # (1, 1) accumulator


def _choose_tile_n(n, k):
    # Keep one (tile_n, K) f32 buffer around <= 4 MiB so the double-buffered
    # pipeline sits comfortably under the scoped VMEM limit on v5e/v6e/v7x
    # (v7x: 64 MiB physical / 32 MiB default scoped).
    cap = (1 << 20) // max(k, 1)          # rows for ~4 MiB of f32
    cap = max(8, min(1024, (cap // 8) * 8))
    return n if n <= cap else cap


def dec_loss(q, *, tile_n=None):
    """q: (N, K) positive soft assignments (any float dtype) -> scalar f32 loss."""
    n, k = q.shape
    if tile_n is None:
        tile_n = _choose_tile_n(n, k)
    else:
        tile_n = min(tile_n, n)
        assert tile_n == n or tile_n % 8 == 0, "tile_n must be N or a multiple of 8"
    nt = pl.cdiv(n, tile_n)

    kernel = functools.partial(_dec_loss_kernel, n_rows=n, tile_n=tile_n)

    cost = pl.CostEstimate(
        flops=8 * n * k,                            # q*q, scales, subs, reduces
        transcendentals=n * k + 2 * (n + k),        # log(q) + small logs/recips
        bytes_accessed=2 * n * k * q.dtype.itemsize + 4,   # two streaming passes
    )

    out = pl.pallas_call(
        kernel,
        out_shape=jax.ShapeDtypeStruct((1, 1), jnp.float32),
        grid=(2, nt),
        in_specs=[pl.BlockSpec((tile_n, k), lambda ph, t: (t, 0))],
        out_specs=pl.BlockSpec((1, 1), lambda ph, t: (0, 0)),
        scratch_shapes=[pltpu.VMEM((1, k), jnp.float32)],   # col_sum accumulator
        compiler_params=pltpu.CompilerParams(
            dimension_semantics=("arbitrary", "arbitrary"),
            vmem_limit_bytes=32 * 1024 * 1024,
        ),
        cost_estimate=cost,
    )(q)                      # native dtype in HBM; cast to f32 happens on-chip
    return out[0, 0]


def dec_loss_ref(q):
    """Pure-JAX reference mirroring the PyTorch forward."""
    q = q.astype(jnp.float32)
    weight = q ** 2 / jnp.sum(q, axis=0)
    p = weight / jnp.sum(weight, axis=1, keepdims=True)
    return jnp.sum(p * jnp.log(p / q))


if __name__ == "__main__":
    key = jax.random.PRNGKey(0)
    k1, k2, k3 = jax.random.split(key, 3)

    # Case 1: f32, N=16 samples, K=32 clusters (single row tile, both phases).
    q1 = jax.nn.softmax(jax.random.normal(k1, (16, 32), jnp.float32), axis=-1)
    out1 = jax.block_until_ready(dec_loss(q1))
    ref1 = dec_loss_ref(q1)
    assert jnp.allclose(out1, ref1, rtol=1e-4, atol=1e-5), (out1, ref1)

    # Case 2: f32, N=40 samples, K=10 clusters with tile_n=16 (multi-tile grid
    # with a ragged, masked last tile).
    q2 = jax.nn.softmax(jax.random.normal(k2, (40, 10), jnp.float32), axis=-1)
    out2 = jax.block_until_ready(dec_loss(q2, tile_n=16))
    ref2 = dec_loss_ref(q2)
    assert jnp.allclose(out2, ref2, rtol=1e-4, atol=1e-5), (out2, ref2)

    # Case 3: bf16 input streamed in its native dtype (cast to f32 on-chip).
    q3 = jax.nn.softmax(jax.random.normal(k3, (16, 32), jnp.float32), axis=-1)
    q3_bf16 = q3.astype(jnp.bfloat16)
    out3 = jax.block_until_ready(dec_loss(q3_bf16))
    ref3 = dec_loss_ref(q3_bf16)
    assert jnp.allclose(out3, ref3, rtol=1e-3, atol=1e-3), (out3, ref3)

    print("KERNEL_OK")
</pallas_src>

<mosaic_0001>
module attributes {stable_mosaic.version = 11 : i64} {
  func.func @_dec_loss_kernel(%arg0: i32, %arg1: i32, %arg2: memref<16x32xf32, #tpu.memory_space<vmem>>, %arg3: memref<1x1xf32, #tpu.memory_space<vmem>>, %arg4: memref<1x32xf32, #tpu.memory_space<vmem>>) attributes {dimension_semantics = [#tpu.dimension_semantics<arbitrary>, #tpu.dimension_semantics<arbitrary>], iteration_bounds = array<i64: 2, 1>, scalar_prefetch = 0 : i64, scratch_operands = 1 : i64, tpu.core_type = #tpu.core_type<tc>, window_params = [{transform_indices = @transform_0, window_bounds = array<i64: 16, 32>}, {pipeline_mode = #tpu.pipeline_mode<synchronous>, transform_indices = @transform_1, window_bounds = array<i64: 1, 1>}]} {
    %c0_i32 = arith.constant 0 : i32
    %0 = arith.cmpi eq, %arg0, %c0_i32 : i32
    %c0_i32_0 = arith.constant 0 : i32
    %1 = arith.cmpi eq, %arg1, %c0_i32_0 : i32
    %2 = arith.andi %0, %1 : i1
    %3 = arith.extui %2 : i1 to i32
    %c0_i32_1 = arith.constant 0 : i32
    %4 = arith.cmpi ne, %3, %c0_i32_1 : i32
    scf.if %4 {
      %cst = arith.constant 0.000000e+00 : f32
      %12 = vector.broadcast %cst : f32 to vector<1x32xf32>
      %c0_6 = arith.constant 0 : index
      %c0_7 = arith.constant 0 : index
      %13 = vector.load %arg4[%c0_6, %c0_7] : memref<1x32xf32, #tpu.memory_space<vmem>>, vector<1x32xf32>
      tpu.vector_store %arg4[%c0_6, %c0_7], %12 {strides = array<i32>} : memref<1x32xf32, #tpu.memory_space<vmem>>, vector<1x32xf32>,
      %cst_8 = arith.constant 0.000000e+00 : f32
      %14 = vector.broadcast %cst_8 : f32 to vector<1x1xf32>
      %c0_9 = arith.constant 0 : index
      %c0_10 = arith.constant 0 : index
      %15 = vector.load %arg3[%c0_9, %c0_10] : memref<1x1xf32, #tpu.memory_space<vmem>>, vector<1x1xf32>
      tpu.vector_store %arg3[%c0_9, %c0_10], %14 {strides = array<i32>} : memref<1x1xf32, #tpu.memory_space<vmem>>, vector<1x1xf32>,
    } else {
    }
    %c0 = arith.constant 0 : index
    %c0_2 = arith.constant 0 : index
    %5 = vector.load %arg2[%c0, %c0_2] : memref<16x32xf32, #tpu.memory_space<vmem>>, vector<16x32xf32>
    %c0_i32_3 = arith.constant 0 : i32
    %6 = arith.cmpi eq, %arg0, %c0_i32_3 : i32
    %7 = arith.extui %6 : i1 to i32
    %c0_i32_4 = arith.constant 0 : i32
    %8 = arith.cmpi ne, %7, %c0_i32_4 : i32
    scf.if %8 {
      %c0_6 = arith.constant 0 : index
      %c0_7 = arith.constant 0 : index
      %12 = vector.load %arg4[%c0_6, %c0_7] : memref<1x32xf32, #tpu.memory_space<vmem>>, vector<1x32xf32>
      %cst = arith.constant dense<0.000000e+00> : vector<32xf32>
      %13 = vector.multi_reduction <add>, %5, %cst [0] : vector<16x32xf32> to vector<32xf32>
      %14 = vector.shape_cast %13 : vector<32xf32> to vector<1x32xf32>
      %15 = arith.addf %12, %14 : vector<1x32xf32>
      %c0_8 = arith.constant 0 : index
      %c0_9 = arith.constant 0 : index
      %16 = vector.load %arg4[%c0_8, %c0_9] : memref<1x32xf32, #tpu.memory_space<vmem>>, vector<1x32xf32>
      tpu.vector_store %arg4[%c0_8, %c0_9], %15 {strides = array<i32>} : memref<1x32xf32, #tpu.memory_space<vmem>>, vector<1x32xf32>,
    } else {
    }
    %c1_i32 = arith.constant 1 : i32
    %9 = arith.cmpi eq, %arg0, %c1_i32 : i32
    %10 = arith.extui %9 : i1 to i32
    %c0_i32_5 = arith.constant 0 : i32
    %11 = arith.cmpi ne, %10, %c0_i32_5 : i32
    scf.if %11 {
      %c0_6 = arith.constant 0 : index
      %c0_7 = arith.constant 0 : index
      %12 = vector.load %arg4[%c0_6, %c0_7] : memref<1x32xf32, #tpu.memory_space<vmem>>, vector<1x32xf32>
      %cst = arith.constant 1.000000e+00 : f32
      %13 = vector.broadcast %cst : f32 to vector<1x32xf32>
      %14 = arith.divf %13, %12 : vector<1x32xf32>
      %15 = math.log %12 : vector<1x32xf32>
      %16 = math.log %5 : vector<16x32xf32>
      %17 = arith.mulf %5, %5 : vector<16x32xf32>
      %18 = vector.broadcast %14 : vector<1x32xf32> to vector<16x32xf32>
      %19 = arith.mulf %17, %18 : vector<16x32xf32>
      %cst_8 = arith.constant dense<0.000000e+00> : vector<16xf32>
      %20 = vector.multi_reduction <add>, %19, %cst_8 [1] : vector<16x32xf32> to vector<16xf32>
      %21 = vector.shape_cast %20 : vector<16xf32> to vector<16x1xf32>
      %cst_9 = arith.constant 1.000000e+00 : f32
      %22 = vector.broadcast %cst_9 : f32 to vector<16x1xf32>
      %23 = arith.divf %22, %21 : vector<16x1xf32>
      %24 = vector.broadcast %15 : vector<1x32xf32> to vector<16x32xf32>
      %25 = arith.subf %16, %24 : vector<16x32xf32>
      %26 = arith.mulf %19, %25 : vector<16x32xf32>
      %cst_10 = arith.constant dense<0.000000e+00> : vector<16xf32>
      %27 = vector.multi_reduction <add>, %26, %cst_10 [1] : vector<16x32xf32> to vector<16xf32>
      %28 = vector.shape_cast %27 : vector<16xf32> to vector<16x1xf32>
      %29 = arith.mulf %28, %23 : vector<16x1xf32>
      %30 = math.log %21 : vector<16x1xf32>
      %31 = arith.subf %29, %30 : vector<16x1xf32>
      %c0_11 = arith.constant 0 : index
      %c0_12 = arith.constant 0 : index
      %32 = vector.load %arg3[%c0_11, %c0_12] : memref<1x1xf32, #tpu.memory_space<vmem>>, vector<1x1xf32>
      %33 = vector.shape_cast %31 : vector<16x1xf32> to vector<1x16x1xf32>
      %cst_13 = arith.constant dense<0.000000e+00> : vector<1xf32>
      %34 = vector.multi_reduction <add>, %33, %cst_13 [1, 2] : vector<1x16x1xf32> to vector<1xf32>
      %35 = vector.shape_cast %34 : vector<1xf32> to vector<1x1x1xf32>
      %36 = vector.extract %35[0, 0, 0] : f32 from vector<1x1x1xf32>
      %37 = vector.broadcast %36 : f32 to vector<1x1xf32>
      %38 = arith.addf %32, %37 : vector<1x1xf32>
      %c0_14 = arith.constant 0 : index
      %c0_15 = arith.constant 0 : index
      %39 = vector.load %arg3[%c0_14, %c0_15] : memref<1x1xf32, #tpu.memory_space<vmem>>, vector<1x1xf32>
      tpu.vector_store %arg3[%c0_14, %c0_15], %38 {strides = array<i32>} : memref<1x1xf32, #tpu.memory_space<vmem>>, vector<1x1xf32>,
    } else {
    }
    return
  }
  func.func @transform_0(%arg0: i32, %arg1: i32) -> (i32, i32) {
    %c0_i32 = arith.constant 0 : i32
    %c0_i32_0 = arith.constant 0 : i32
    return %arg1, %c0_i32 : i32, i32
  }
  func.func @transform_1(%arg0: i32, %arg1: i32) -> (i32, i32) {
    %c0_i32 = arith.constant 0 : i32
    %c0_i32_0 = arith.constant 0 : i32
    %c0_i32_1 = arith.constant 0 : i32
    return %c0_i32, %c0_i32_0 : i32, i32
  }
}

</mosaic_0001>

<bundles_post_ra>
// kernel: tpu_custom_call.1
= control target key start
LH: loop header
LB: loop body
LE: loop exit
PB: predicated region body
PF: predicated region fallthrough
CT: control target
= control target key end

     0   :  { %6 = vsyncpa [#allocation4], 0  ;;  %s542_s0 = inlined_call_operand.hbm [shape: f32[16,32], index: 0, kind: input, shape index: {}]   ;;  %s543_s1 = inlined_call_operand.hbm [shape: f32[1,1], index: 1, kind: output, shape index: {}]  }
   0x1   :  { %7 = vsyncpa [#allocation5], 0  ;;  %s499_s6 = smov 0   ;;  %s501_s7 = smov 0  }
   0x2   :  { %s503_s8 = smov 0  }
   0x3 LB: > { %s318_s9 = sadd.s32 4294967295, %s482_s8   ;;  %s25_s10 = sadd.s32 1, %s478_s7  ;;  %s482_s8 = sphi %s503_s8, %s13_s8   ;;  %s478_s7 = sphi %s501_s7, %s545_s7   ;;  %s474_s6 = sphi %s499_s6, %s544_s6  }
   0x4   : > { %p27_p0 = scmp.ge.s32.totalorder %s25_s10, 2  ;;  %p319_p1 = scmp.ge.s32.totalorder %s482_s8, 1 }
   0x5   : > { %p77_p2 = scmp.lt.s32.totalorder %s482_s8, 3  ;;  %p345_p4 = scmp.eq.s32.totalorder %s318_s9, 0 }
   0x6   : > { %s547_s10 = smov (%p27_p0, %s25_s10), 0  ;;  %s91_s13 = sshll.u32 %s542_s0, 4  ;;  %s92_s13 = int_to_ptr.hbm [resolvable:$true] %s91_s13 }
   0x7   : > { %p78_p3 = pnand %p319_p1, %p77_p2  ;;  %s484_s14 = smov [#allocation3]  }
   0x8   : > { %s93_s15 = sshll.u32 %s484_s14, 4  ;;  %s485_s16 = smov 128   ;;  %s94_s15 = int_to_ptr.vmem [resolvable:$true] %s93_s15 }
   0x9   : > { %p341_p5 = pneg %p78_p3  ;;  %s486_s17 = smov 8  }
   0xa   : > { %109 = sbr.rel (%p78_p3) target bundleno = 415 (0x19f), region = 24 }
   0xb   : > { %p342_p6 = pnand %p345_p4, %p341_p5 }
   0xd   : > { %344 = dma.hbm_to_vmem [thread:$0]  (!%p342_p6), %s92_s13, 256, %s94_s15, [#allocation4], %s485_s16, %s485_s16, %s486_s17  }
   0xf   : > { %465 = dma.done.wait (%p345_p4), [#allocation4], 256  }
  0x10   : > { %467 = vsyncadd (%p345_p4), [#allocation4], 4294967040  ;;  %p121_p7 = scmp.eq.s32.totalorder %s474_s6, 0 }
  0x11   : > { %vm127_vm0 = vcmask (%p121_p7), 253952   ;;  %vm129_vm1 = vcmask (%p121_p7), 0   ;;  %v487_v0 = vmov (%p121_p7), 0.0  }
  0x12   : > { %126 = sbr.rel (!%p121_p7) target bundleno = 23 (0x17), region = 32  ;;  %128 = vst.msk [vmem:[#allocation2] sm:$0x1] (%p121_p7), %vm127_vm0, %v487_v0 }
  0x13   : > { %130 = vst.msk [vmem:[#allocation6] sm:$0x1] (%p121_p7), %vm129_vm1, %v487_v0 }
  0x17 PF: > { %v131_v1 = vld [vmem:[#allocation3] sm:$0xff]  ;;  %v132_v2 = vld [vmem:[#allocation3 + $0x8] sm:$0xff]  ;;  %p324_p8 = scmp.ne.s32.totalorder %s474_s6, 0 }
  0x19   : > { %135 = sbr.rel (%p324_p8) target bundleno = 49 (0x31), region = 36 }
  0x1e   : > { %vm137_vm2 = vcmask 261120   ;;  %v136_v11 = vld [vmem:[#allocation2] sm:$0x1]  ;;  %vm148_vm3 = vcmask 253952  }
  0x1f   : > { %v138_v3 = vsel %vm137_vm2, %v131_v1, 0.0  ;;  %v139_v4 = vsel %vm137_vm2, %v132_v2, 0.0 }
  0x20   : > { %v140_v5 = vadd.f32 %v139_v4, %v138_v3 }
  0x22   : > { %v141_v6 = vrot.slane %v140_v5, 4 }
  0x24   : > { %v142_v7 = vadd.f32 %v141_v6, %v140_v5 }
  0x26   : > { %v143_v8 = vrot.slane %v142_v7, 2 }
  0x28   : > { %v144_v9 = vadd.f32 %v143_v8, %v142_v7 }
  0x2a   : > { %v145_v10 = vrot.slane %v144_v9, 1 }
  0x2c   : > { %v146_v12 = vadd.f32 %v145_v10, %v144_v9 }
  0x2e   : > { %v147_v13 = vadd.f32 %v146_v12, %v136_v11 }
  0x30   : > { %149 = vst.msk [vmem:[#allocation2] sm:$0x1] %vm148_vm3, %v147_v13 }
  0x31 PF: > { %p325_p9 = scmp.ne.s32.totalorder %s474_s6, 1 }
  0x33   : > { %153 = sbr.rel (%p325_p9) target bundleno = 409 (0x199), region = 40 }
  0x38   : > { %v154_v14 = vld [vmem:[#allocation2] sm:$0x1]  ;;  %v176_v30 = vmul.f32 %v131_v1, %v131_v1  ;;  %vm183_vm8 = vcmask 261120   ;;  %v177_v36 = vmul.f32 %v132_v2, %v132_v2  ;;  %vm242_vm1 = vcmask 7168  }
  0x39   : > { %378 = vrcp.f32 %v154_v14  ;;  %vm160_vm4 = vweird.f32 %v154_v14  ;;  %v166_v18 = vand.u32 2147483648, %v154_v14  ;;  %v164_v20 = vand.u32 2147483647, %v154_v14 }
  0x3a   : > { %380 = vlog2.f32 %v154_v14  ;;  %vm257_vm2 = vcmask 0  }
  0x3b   : > { %382 = vlog2.f32 %v131_v1  ;;  %v167_v24 = vor.u32 1.1754944e-38, %v166_v18  ;;  %vm165_vm7 = vcmp.eq.f32.partialorder %v164_v20, 8.507059e+37 }
  0x3c   : > { %384 = vlog2.f32 %v132_v2 }
  0x3f   : > { %v379_v15 = vpop.eup %378 }
  0x40   : > { %v381_v16 = vpop.eup %380  ;;  %v156_v17 = vmul.f32 %v379_v15, %v154_v14  ;;  %vm161_vm5 = vweird.f32 %v379_v15 }
  0x41   : > { %v171_v21 = vmul.f32 0.6931472, %v381_v16  ;;  %v383_v22 = vpop.eup %382  ;;  %vm162_vm6 = vmor %vm160_vm4, %vm161_vm5 }
  0x42   : > { %v157_v19 = vsub.f32 1.0, %v156_v17  ;;  %v173_v26 = vmul.f32 0.6931472, %v383_v22  ;;  %v385_v28 = vpop.eup %384 }
  0x43   : > { %v221_v27 = vperm.slane %v171_v21, 0  ;;  %v175_v34 = vmul.f32 0.6931472, %v385_v28 }
  0x44   : > { %v158_v23 = vmul.f32 %v379_v15, %v157_v19 }
  0x45   : > { %v223_v33 = vsub.f32 %v173_v26, %v221_v27  ;;  %v224_v39 = vsub.f32 %v175_v34, %v221_v27 }
  0x46   : > { %v159_v25 = vadd.f32 %v379_v15, %v158_v23  ;;  %v241_v23 = vld [vmem:[#allocation6] sm:$0x1] }
  0x48   : > { %v163_v29 = vsel %vm162_vm6, %v379_v15, %v159_v25 }
  0x49   : > { %v168_v31 = vsel %vm165_vm7, %v167_v24, %v163_v29 }
  0x4a   : > { %v179_v32 = vperm.slane %v168_v31, 0 }
  0x4c   : > { %v181_v35 = vmul.f32 %v179_v32, %v176_v30  ;;  %v182_v40 = vmul.f32 %v179_v32, %v177_v36 }
  0x4e   : > { %v184_v37 = vsel %vm183_vm8, %v181_v35, 0.0  ;;  %v225_v38 = vmul.f32 %v223_v33, %v181_v35  ;;  %v226_v42 = vmul.f32 %v224_v39, %v182_v40  ;;  %v187_v43 = vsel %vm183_vm8, %v182_v40, 0.0 }
  0x4f   : > { %185 = vadd.xlane.f32.xlu0 %v184_v37 }
  0x50   : > { %v227_v41 = vsel %vm183_vm8, %v225_v38, 0.0  ;;  %v230_v44 = vsel %vm183_vm8, %v226_v42, 0.0 }
  0x51   : > { %228 = vadd.xlane.f32.xlu1 %v227_v41 }
  0x57   : > { %188 = vadd.xlane.f32.xlu0 %v187_v43 }
  0x59   : > { %231 = vadd.xlane.f32.xlu1 %v230_v44 }
  0xc2   : > { %v186_v45 = vpop.xlane.xlu0 %185 }
  0xc3   : > { %386 = vrcp.f32 %v186_v45  ;;  %v201_v52 = vand.u32 2147483648, %v186_v45  ;;  %vm195_vm10 = vweird.f32 %v186_v45  ;;  %v199_v54 = vand.u32 2147483647, %v186_v45 }
  0xc4   : > { %v229_v51 = vpop.xlane.xlu1 %228 }
  0xc5   : > { %v202_v58 = vor.u32 1.1754944e-38, %v201_v52  ;;  %vm200_vm12 = vcmp.eq.f32.partialorder %v199_v54, 8.507059e+37 }
  0xc9   : > { %v387_v46 = vpop.eup %386 }
  0xca   : > { %v191_v47 = vmul.f32 %v387_v46, %v186_v45  ;;  %v189_v48 = vpop.xlane.xlu0 %188  ;;  %vm196_vm9 = vweird.f32 %v387_v46 }
  0xcb   : > { %388 = vrcp.f32 %v189_v48  ;;  %vm197_vm11 = vmor %vm195_vm10, %vm196_vm9  ;;  %v216_v61 = vand.u32 2147483648, %v189_v48  ;;  %v214_v63 = vand.u32 2147483647, %v189_v48  ;;  %vm210_vm14 = vweird.f32 %v189_v48 }
  0xcc   : > { %v192_v49 = vsub.f32 1.0, %v191_v47  ;;  %390 = vlog2.f32 %v186_v45  ;;  %v232_v4 = vpop.xlane.xlu1 %231 }
  0xcd   : > { %392 = vlog2.f32 %v189_v48  ;;  %v217_v5 = vor.u32 1.1754944e-38, %v216_v61  ;;  %vm215_vm0 = vcmp.eq.f32.partialorder %v214_v63, 8.507059e+37 }
  0xce   : > { %v193_v50 = vmul.f32 %v387_v46, %v192_v49 }
  0xd0   : > { %v194_v53 = vadd.f32 %v387_v46, %v193_v50 }
  0xd1   : > { %v389_v55 = vpop.eup %388 }
  0xd2   : > { %v206_v56 = vmul.f32 %v389_v55, %v189_v48  ;;  %v198_v57 = vsel %vm197_vm11, %v387_v46, %v194_v53  ;;  %vm211_vm13 = vweird.f32 %v389_v55  ;;  %v391_v0 = vpop.eup %390 }
  0xd3   : > { %v203_v60 = vsel %vm200_vm12, %v202_v58, %v198_v57  ;;  %v393_v3 = vpop.eup %392  ;;  %vm212_vm15 = vmor %vm210_vm14, %vm211_vm13  ;;  %v236_v6 = vmul.f32 0.6931472, %v391_v0 }
  0xd4   : > { %v207_v59 = vsub.f32 1.0, %v206_v56  ;;  %v233_v1 = vmul.f32 %v229_v51, %v203_v60  ;;  %v238_v11 = vmul.f32 0.6931472, %v393_v3 }
  0xd6   : > { %v208_v62 = vmul.f32 %v389_v55, %v207_v59  ;;  %v239_v9 = vsub.f32 %v233_v1, %v236_v6 }
  0xd8   : > { %v209_v2 = vadd.f32 %v389_v55, %v208_v62  ;;  %v243_v13 = vsel %vm242_vm1, %v239_v9, 0.0 }
  0xda   : > { %v213_v7 = vsel %vm212_vm15, %v389_v55, %v209_v2 }
  0xdb   : > { %v218_v8 = vsel %vm215_vm0, %v217_v5, %v213_v7 }
  0xdc   : > { %v234_v10 = vmul.f32 %v232_v4, %v218_v8 }
  0xde   : > { %v240_v12 = vsub.f32 %v234_v10, %v238_v11 }
  0xe0   : > { %v244_v14 = vsel %vm242_vm1, %v240_v12, 0.0 }
  0xe1   : > { %v245_v15 = vadd.f32 %v244_v14, %v243_v13 }
  0xe3   : > { %246 = vadd.xlane.f32.xlu2 %v245_v15 }
 0x156   : > { %v247_v16 = vpop.xlane.xlu2 %246 }
 0x157   : > { %v248_v17 = vrot.slane %v247_v16, 4 }
 0x159   : > { %v249_v18 = vadd.f32 %v248_v17, %v247_v16 }
 0x15b   : > { %v250_v19 = vrot.slane %v249_v18, 2 }
 0x15d   : > { %v251_v20 = vadd.f32 %v250_v19, %v249_v18 }
 0x15f   : > { %v252_v21 = vrot.slane %v251_v20, 1 }
 0x161   : > { %v253_v22 = vadd.f32 %v252_v21, %v251_v20 }
 0x163   : > { %331 = vpush %v253_v22 }
 0x194   : > { %s332_s18 = spop %331 }
 0x195   : > { %v255_v24 = vstv %s332_s18 }
 0x196   : > { %v256_v25 = vadd.f32 %v255_v24, %v241_v23 }
 0x198   : > { %258 = vst.msk [vmem:[#allocation6] sm:$0x1] %vm257_vm2, %v256_v25 }
 0x199 PF: > { %p347_p10 = scmp.eq.s32.totalorder %s318_s9, 1  ;;  %s267_s21 = sshll.u32 %s543_s1, 4  ;;  %s268_s21 = int_to_ptr.hbm [resolvable:$true] %s267_s21 }
 0x19a   : > { %s488_s22 = smov [#allocation6]  }
 0x19b   : > { %s265_s23 = sshll.u32 %s488_s22, 4  ;;  %s266_s23 = int_to_ptr.vmem [resolvable:$true] %s265_s23 }
 0x19c   : > { %338 = dma.vmem_to_hbm [thread:$0]  (%p347_p10), %s266_s23, 16, %s268_s21, [#allocation5]  }
 0x19d   : > { %469 = dma.done.wait (%p347_p10), [#allocation5], 16  }
 0x19e   : > { %471 = vsyncadd (%p347_p10), [#allocation5], 4294967280 }
 0x19f PF: > { %s13_s8 = sadd.s32 1, %s482_s8   ;;  %s544_s6 = smov %s478_s7 }
 0x1a0   : > { %p10_p11 = scmp.ge.s32.totalorder %s13_s8, 4   ;;  %s545_s7 = smov %s547_s10 }
 0x1a2   :  { %12 = sbr.rel (!%p10_p11) target bundleno = 3 (0x3), region = 66 }
 0x1a7   :  { %281 = vsyncpa [#allocation4], 1 }
 0x1a8   :  { %283 = vsyncpa [#allocation4 + $0x1], 1 }
 0x1a9   :  { %284 = vsyncpa [#allocation5], 1 }
 0x1aa   :  { %286 = vsyncpa [#allocation5 + $0x1], 1 }

</bundles_post_ra>
